<compile_context>
chip_gen: v5e
topology: v5e:2x2
jax: 0.10.0
libtpu: 0.0.40
codegen_flags: <defaults>
</compile_context>

<pallas_src>
import numpy as np
import jax
import jax.numpy as jnp
from jax.experimental import pallas as pl
from jax.experimental.pallas import tpu as pltpu

_SIZES = (1, 2, 3)


# ----------------------------------------------------------------------------
# Host-side helpers: adaptive-avg-pool / bilinear-upsample matrices (PyTorch exact)
# ----------------------------------------------------------------------------
def _adaptive_pool_matrix(in_size, out_size):
    """P[i, h] = 1/len(bin_i) if h in adaptive bin i (PyTorch AdaptiveAvgPool2d)."""
    P = np.zeros((out_size, in_size), dtype=np.float32)
    for i in range(out_size):
        start = (i * in_size) // out_size
        end = -((-(i + 1) * in_size) // out_size)  # ceil((i+1)*in/out)
        P[i, start:end] = 1.0 / (end - start)
    return P


def _bilinear_matrix(out_size, in_size):
    """M[o, i] bilinear weights, align_corners=False (PyTorch interpolate)."""
    M = np.zeros((out_size, in_size), dtype=np.float32)
    scale = in_size / out_size
    for o in range(out_size):
        src = (o + 0.5) * scale - 0.5
        if src < 0.0:
            src = 0.0
        i0 = min(int(np.floor(src)), in_size - 1)
        i1 = min(i0 + 1, in_size - 1)
        l1 = src - i0
        M[o, i0] += 1.0 - l1
        M[o, i1] += l1
    return M


# ----------------------------------------------------------------------------
# VMEM-aware tile sizing (generation aware via get_tpu_info)
# ----------------------------------------------------------------------------
def _vmem_limit_bytes():
    try:
        cap = int(pltpu.get_tpu_info().vmem_capacity_bytes)
    except Exception:
        cap = 64 * 1024 * 1024          # conservative (v7x-sized) default
    # ~48 MiB on v7x (64 MiB phys), ~96 MiB on v5e/v6e (128 MiB phys).
    return min(int(cap * 0.75), 100 * 1024 * 1024)


def _pick_hw_tile(HWp, Cin, Cout, K, budget_bytes):
    """Largest 128-multiple tile whose double-buffered streams fit the budget."""
    for t in (2048, 1024, 512, 256, 128):
        if HWp % t:
            continue
        # kernel A: 2x bf16 x-tile, 2x bf16 PT-tile, f32 accumulator
        a = 2 * (Cin * t * 2 + t * K * 2) + Cin * K * 4
        # kernel B: 2x bf16 x-tile, 2x bf16 UT-tile, 2x f32 out-tile,
        #           plus (conservatively double-buffered) wfTx / zw constants.
        b = (2 * (Cin * t * 2 + K * t * 2 + Cout * t * 4)
             + 2 * (Cout * Cin * 2 + Cout * K * 2))
        if max(a, b) <= budget_bytes:
            return t
    return 128  # HWp is always a multiple of 128


# ----------------------------------------------------------------------------
# Kernel A: adaptive pooling (HW reduction).  pooled = x (Cin,HW) @ PT (HW,K).
# ----------------------------------------------------------------------------
def _pool_kernel(x_ref, pt_ref, pooled_ref, acc_ref):
    k = pl.program_id(2)

    @pl.when(k == 0)
    def _():
        acc_ref[...] = jnp.zeros_like(acc_ref)

    acc_ref[...] += jnp.dot(x_ref[0], pt_ref[...],
                            preferred_element_type=jnp.float32)

    @pl.when(k == pl.num_programs(2) - 1)
    def _():
        pooled_ref[0, 0] = acc_ref[...]


# ----------------------------------------------------------------------------
# Kernel B: per-HW-tile   y = relu( WfT_x @ x_tile + ZW_cat @ UT_tile )
# (the final-conv bias lives in zw's last valid column against UT's ones-row)
# ----------------------------------------------------------------------------
def _main_kernel(x_ref, ut_ref, zw_ref, wfxT_ref, o_ref):
    y = jnp.dot(wfxT_ref[...], x_ref[0], preferred_element_type=jnp.float32)
    y = y + jnp.dot(zw_ref[0], ut_ref[...], preferred_element_type=jnp.float32)
    o_ref[0] = jnp.maximum(y, 0.0).astype(o_ref.dtype)


# ----------------------------------------------------------------------------
# Wrapper (NCHW in / NCHW out, no transposes — only reshapes)
# ----------------------------------------------------------------------------
def psp_module_pallas(x_nchw, params, hw_tile=None, pool_split=None):
    N, Cin, H, W = x_nchw.shape
    assert (H, W) == (params["H"], params["W"]), "params prepared for other H,W"
    HW = H * W
    HWp = params["HWp"]
    K = params["K"]
    Cout = params["wfTx"].shape[0]

    # channel-major flatten; HW (padded to a 128 multiple) is the lane axis.
    x_flat = x_nchw.reshape(N, Cin, HW).astype(jnp.bfloat16)
    if HWp != HW:
        x_flat = jnp.pad(x_flat, ((0, 0), (0, 0), (0, HWp - HW)))

    vmem_limit = _vmem_limit_bytes()
    T = hw_tile or _pick_hw_tile(HWp, Cin, Cout, K, int(vmem_limit * 0.9))
    assert HWp % T == 0 and T % 128 == 0, (HWp, T)
    KT = HWp // T

    # Optional split of the pooling reduction (second "parallel" axis) so that
    # batch-1 inference still exercises both v7x TensorCores.
    S = pool_split or (2 if (N == 1 and KT % 2 == 0) else 1)
    assert KT % S == 0, (KT, S)
    KTS = KT // S

    # --------------------------- kernel A: pooling ---------------------------
    cost_a = pl.CostEstimate(
        flops=2 * N * Cin * HWp * K,
        transcendentals=0,
        bytes_accessed=(N * Cin * HWp * 2 + N * S * HWp * K * 2
                        + N * S * Cin * K * 4))

    pooled_parts = pl.pallas_call(
        _pool_kernel,
        out_shape=jax.ShapeDtypeStruct((N, S, Cin, K), jnp.float32),
        grid_spec=pltpu.PrefetchScalarGridSpec(
            num_scalar_prefetch=0,
            grid=(N, S, KTS),
            in_specs=[
                pl.BlockSpec((1, Cin, T), lambda n, sp, k: (n, 0, sp * KTS + k)),
                pl.BlockSpec((T, K), lambda n, sp, k: (sp * KTS + k, 0)),
            ],
            out_specs=pl.BlockSpec((1, 1, Cin, K), lambda n, sp, k: (n, sp, 0, 0)),
            scratch_shapes=[pltpu.VMEM((Cin, K), jnp.float32)],
        ),
        compiler_params=pltpu.CompilerParams(
            dimension_semantics=("parallel", "parallel", "arbitrary"),
            vmem_limit_bytes=vmem_limit),
        cost_estimate=cost_a,
    )(x_flat, params["PT"])
    pooled = pooled_parts.sum(axis=1)                       # (N, Cin, K) f32

    # ---------------- tiny branch convs + reassociation (plain XLA) ----------
    hp = jax.lax.Precision.HIGHEST
    cols = []
    for br in params["branches"]:
        p_s = pooled[:, :, br["off"]:br["off"] + br["n"]]   # (N, Cin, s*s)
        z = jax.nn.relu(jnp.einsum("oc,ncp->nop", br["wb"], p_s, precision=hp)
                        + br["shift"][None, :, None])
        cols.append(jnp.einsum("oq,nqp->nop", br["wf"], z, precision=hp))
    cols.append(jnp.broadcast_to(params["bf"][None, :, None], (N, Cout, 1)))
    n_valid = sum(br["n"] for br in params["branches"])
    n_pad = K - n_valid - 1
    if n_pad:
        cols.append(jnp.zeros((N, Cout, n_pad), jnp.float32))
    zw = jnp.concatenate(cols, axis=-1).astype(jnp.bfloat16)  # (N, Cout, K)

    # --------------------------- kernel B: main pass -------------------------
    cost_b = pl.CostEstimate(
        flops=2 * N * Cout * (Cin + K) * HWp,
        transcendentals=0,
        bytes_accessed=(N * Cin * HWp * 2 + K * HWp * 2 + N * Cout * HWp * 4
                        + Cout * Cin * 2 + N * Cout * K * 2))

    def run_main(single_buffer_consts):
        wfx_kwargs = {}
        if single_buffer_consts and hasattr(pl, "Buffered"):
            # wfTx never changes across the grid -> a single VMEM copy suffices.
            wfx_kwargs["pipeline_mode"] = pl.Buffered(1)
        wfx_spec = pl.BlockSpec((Cout, Cin), lambda t, n: (0, 0), **wfx_kwargs)
        return pl.pallas_call(
            _main_kernel,
            out_shape=jax.ShapeDtypeStruct((N, Cout, HWp), jnp.float32),
            grid_spec=pltpu.PrefetchScalarGridSpec(
                num_scalar_prefetch=0,
                grid=(KT, N),    # HW-tile outer, batch inner: UT block index is
                in_specs=[       # constant along the inner axis (re-fetch elided).
                    pl.BlockSpec((1, Cin, T), lambda t, n: (n, 0, t)),
                    pl.BlockSpec((K, T), lambda t, n: (0, t)),
                    pl.BlockSpec((1, Cout, K), lambda t, n: (n, 0, 0)),
                    wfx_spec,
                ],
                out_specs=pl.BlockSpec((1, Cout, T), lambda t, n: (n, 0, t)),
            ),
            compiler_params=pltpu.CompilerParams(
                dimension_semantics=("parallel", "parallel"),
                vmem_limit_bytes=vmem_limit),
            cost_estimate=cost_b,
        )(x_flat, params["UT"], zw, params["wfTx"])

    try:
        out = run_main(True)
    except Exception:
        # pipeline_mode / Buffered(1) unsupported on this jax version: fall back
        # to default double-buffering (correctness identical).
        out = run_main(False)

    out = out[:, :, :HW]
    return out.reshape(N, Cout, H, W)


# ----------------------------------------------------------------------------
# Parameter init (raw PyTorch-like params) and host-side folding / matrix prep.
# ----------------------------------------------------------------------------
def init_raw_params(key, in_channels, out_channels, sizes=_SIZES):
    ks = jax.random.split(key, 8)

    def conv_w(k, cout, cin):
        bound = 1.0 / np.sqrt(cin)
        return jax.random.uniform(k, (cout, cin), jnp.float32, -bound, bound)

    def bn(k):
        k1, k2, k3, k4 = jax.random.split(k, 4)
        gamma = jax.random.uniform(k1, (out_channels,), jnp.float32, 0.5, 1.5)
        beta = jax.random.uniform(k2, (out_channels,), jnp.float32, -0.5, 0.5)
        rm = 0.1 * jax.random.normal(k3, (out_channels,), jnp.float32)
        rv = jax.random.uniform(k4, (out_channels,), jnp.float32, 0.5, 1.5)
        return (gamma, beta, rm, rv)

    b_bound = 1.0 / np.sqrt(in_channels)
    cat_ch = in_channels + len(sizes) * out_channels
    return {
        "w1": conv_w(ks[0], out_channels, in_channels),
        "b1": jax.random.uniform(ks[1], (out_channels,), jnp.float32,
                                 -b_bound, b_bound),
        "w2": conv_w(ks[2], out_channels, in_channels),
        "bn2": bn(ks[3]),
        "w3": conv_w(ks[4], out_channels, in_channels),
        "bn3": bn(ks[5]),
        "wf": conv_w(ks[6], out_channels, cat_ch),   # concat order [up1,up2,up3,x]
        "bnf": bn(ks[7]),
    }


def prepare_params(raw, H, W, sizes=_SIZES):
    eps = 1e-5
    Cout, Cin = raw["w1"].shape
    HW = H * W
    HWp = ((HW + 127) // 128) * 128     # pad HW to a lane multiple

    def fold(bn):
        g, b, rm, rv = bn
        s = g / jnp.sqrt(rv + eps)
        return s, b - rm * s

    af, sf = fold(raw["bnf"])
    wf = raw["wf"]

    n_valid = sum(s * s for s in sizes)
    K = ((n_valid + 1 + 7) // 8) * 8    # +1 bias column, round up to sublane mult.

    PT = np.zeros((HWp, K), np.float32)     # pooled = x (Cin,HWp) @ PT
    UT = np.zeros((K, HWp), np.float32)     # up+bias = zw (Cout,K) @ UT
    branches = []
    off = 0
    for idx, s in enumerate(sizes):
        P = np.kron(_adaptive_pool_matrix(H, s), _adaptive_pool_matrix(W, s))
        U = np.kron(_bilinear_matrix(H, s), _bilinear_matrix(W, s))
        PT[:HW, off:off + s * s] = P.T
        UT[off:off + s * s, :HW] = U.T
        w = raw["w%d" % (idx + 1)]
        if s == 1:                       # branch 1: plain conv bias, no BN
            wb, shift = w, raw["b1"]
        else:                            # branches 2/3: BN folded into weight
            a, sh = fold(raw["bn%d" % (idx + 1)])
            wb, shift = a[:, None] * w, sh
        branches.append(dict(
            off=off, n=s * s,
            wb=jnp.asarray(wb, jnp.float32),
            shift=jnp.asarray(shift, jnp.float32),
            wf=jnp.asarray(af[:, None] * wf[:, idx * Cout:(idx + 1) * Cout],
                           jnp.float32)))
        off += s * s
    UT[off, :] = 1.0                     # ones row -> zw's bias column

    return {
        "H": H, "W": W, "HWp": HWp, "K": K,
        "PT": jnp.asarray(PT, jnp.bfloat16),
        "UT": jnp.asarray(UT, jnp.bfloat16),
        "wfTx": jnp.asarray(af[:, None] * wf[:, len(sizes) * Cout:], jnp.bfloat16),
        "bf": jnp.asarray(sf, jnp.float32),
        "branches": tuple(branches),
    }


# ----------------------------------------------------------------------------
# Pure-JAX reference (unfolded params, highest precision) for the self-check.
# ----------------------------------------------------------------------------
def psp_reference(x_nchw, raw, sizes=_SIZES):
    eps = 1e-5
    hp = jax.lax.Precision.HIGHEST
    N, Cin, H, W = x_nchw.shape
    HW = H * W
    xf = x_nchw.reshape(N, Cin, HW).astype(jnp.float32)

    def fold(bn):
        g, b, rm, rv = bn
        s = g / jnp.sqrt(rv + eps)
        return s, b - rm * s

    ups = []
    for idx, s in enumerate(sizes):
        P = jnp.asarray(np.kron(_adaptive_pool_matrix(H, s),
                                _adaptive_pool_matrix(W, s)))
        U = jnp.asarray(np.kron(_bilinear_matrix(H, s),
                                _bilinear_matrix(W, s)))
        pooled = jnp.einsum("nch,ph->ncp", xf, P, precision=hp)
        z = jnp.einsum("oc,ncp->nop", raw["w%d" % (idx + 1)], pooled, precision=hp)
        if s == 1:
            z = z + raw["b1"][None, :, None]
        else:
            sc, sh = fold(raw["bn%d" % (idx + 1)])
            z = z * sc[None, :, None] + sh[None, :, None]
        z = jax.nn.relu(z)
        ups.append(jnp.einsum("hp,nop->noh", U, z, precision=hp))

    cat = jnp.concatenate(ups + [xf], axis=1)
    y = jnp.einsum("oc,nch->noh", raw["wf"], cat, precision=hp)
    sc, sh = fold(raw["bnf"])
    y = jax.nn.relu(y * sc[None, :, None] + sh[None, :, None])
    return y.reshape(N, -1, H, W)


if __name__ == "__main__":
    key = jax.random.PRNGKey(0)
    k_x, k_p, k_x2 = jax.random.split(key, 3)

    # ---- test 1: HW already a multiple of 128 ----
    N, Cin, Cout, H, W = 2, 8, 8, 16, 16
    x = jax.random.normal(k_x, (N, Cin, H, W), jnp.float32)
    raw = init_raw_params(k_p, Cin, Cout)
    params = prepare_params(raw, H, W)
    ref = psp_reference(x, raw)

    # (a) auto tile; (b) forced HW tiling -> multi-step pooling reduction;
    # (c) split pooling reduction (dual-TensorCore path).
    for cfg in (dict(), dict(hw_tile=128), dict(hw_tile=128, pool_split=2)):
        out = jax.block_until_ready(psp_module_pallas(x, params, **cfg))
        assert out.shape == (N, Cout, H, W), out.shape
        # bf16 streaming operands -> slightly looser tolerance than pure f32.
        if not bool(jnp.allclose(out, ref, rtol=3e-2, atol=3e-2)):
            raise AssertionError(
                f"mismatch vs reference {cfg}, max abs err = "
                f"{float(jnp.max(jnp.abs(out - ref)))}")

    # ---- test 2: HW NOT a multiple of 128 (exercises the padding path) ----
    N2, H2, W2 = 1, 10, 10
    x2 = jax.random.normal(k_x2, (N2, Cin, H2, W2), jnp.float32)
    params2 = prepare_params(raw, H2, W2)
    ref2 = psp_reference(x2, raw)
    out2 = jax.block_until_ready(psp_module_pallas(x2, params2))
    assert out2.shape == (N2, Cout, H2, W2), out2.shape
    if not bool(jnp.allclose(out2, ref2, rtol=3e-2, atol=3e-2)):
        raise AssertionError(
            "mismatch vs reference (padded HW), max abs err = "
            f"{float(jnp.max(jnp.abs(out2 - ref2)))}")

    print("KERNEL_OK")
</pallas_src>

<mosaic_0001>
module attributes {stable_mosaic.version = 11 : i64} {
  func.func @_pool_kernel(%arg0: i32, %arg1: i32, %arg2: i32, %arg3: memref<1x8x256xbf16, #tpu.memory_space<vmem>>, %arg4: memref<256x16xbf16, #tpu.memory_space<vmem>>, %arg5: memref<1x1x8x16xf32, #tpu.memory_space<vmem>>, %arg6: memref<8x16xf32, #tpu.memory_space<vmem>>) attributes {dimension_semantics = [#tpu.dimension_semantics<parallel>, #tpu.dimension_semantics<parallel>, #tpu.dimension_semantics<arbitrary>], iteration_bounds = array<i64: 2, 1, 1>, scalar_prefetch = 0 : i64, scratch_operands = 1 : i64, tpu.core_type = #tpu.core_type<tc>, window_params = [{transform_indices = @transform_0, window_bounds = array<i64: 1, 8, 256>}, {transform_indices = @transform_1, window_bounds = array<i64: 256, 16>}, {transform_indices = @transform_2, window_bounds = array<i64: 1, 1, 8, 16>}]} {
    %c0_i32 = arith.constant 0 : i32
    %0 = arith.cmpi eq, %arg2, %c0_i32 : i32
    %1 = arith.extui %0 : i1 to i32
    %c0_i32_0 = arith.constant 0 : i32
    %2 = arith.cmpi ne, %1, %c0_i32_0 : i32
    scf.if %2 {
      %cst_11 = arith.constant 0.000000e+00 : f32
      %13 = vector.broadcast %cst_11 : f32 to vector<8x16xf32>
      %c0_12 = arith.constant 0 : index
      %c0_13 = arith.constant 0 : index
      %14 = vector.load %arg6[%c0_12, %c0_13] : memref<8x16xf32, #tpu.memory_space<vmem>>, vector<8x16xf32>
      tpu.vector_store %arg6[%c0_12, %c0_13], %13 {strides = array<i32>} : memref<8x16xf32, #tpu.memory_space<vmem>>, vector<8x16xf32>,
    } else {
    }
    %c0 = arith.constant 0 : index
    %c0_1 = arith.constant 0 : index
    %3 = vector.load %arg6[%c0, %c0_1] : memref<8x16xf32, #tpu.memory_space<vmem>>, vector<8x16xf32>
    %c0_2 = arith.constant 0 : index
    %c0_3 = arith.constant 0 : index
    %c0_4 = arith.constant 0 : index
    %4 = vector.load %arg3[%c0_2, %c0_3, %c0_4] : memref<1x8x256xbf16, #tpu.memory_space<vmem>>, vector<1x8x256xbf16>
    %5 = vector.shape_cast %4 : vector<1x8x256xbf16> to vector<8x256xbf16>
    %c0_5 = arith.constant 0 : index
    %c0_6 = arith.constant 0 : index
    %6 = vector.load %arg4[%c0_5, %c0_6] : memref<256x16xbf16, #tpu.memory_space<vmem>>, vector<256x16xbf16>
    %cst = arith.constant dense<0.000000e+00> : vector<8x16xf32>
    %7 = tpu.matmul %5, %6, %cst {dimension_numbers = #tpu.dot_dimension_numbers<[1], [0], [0], [1], [0, 0, 1, 1], [], []>} : vector<8x256xbf16>, vector<256x16xbf16>, vector<8x16xf32> -> vector<8x16xf32>
    %8 = arith.addf %3, %7 : vector<8x16xf32>
    %c0_7 = arith.constant 0 : index
    %c0_8 = arith.constant 0 : index
    %9 = vector.load %arg6[%c0_7, %c0_8] : memref<8x16xf32, #tpu.memory_space<vmem>>, vector<8x16xf32>
    tpu.vector_store %arg6[%c0_7, %c0_8], %8 {strides = array<i32>} : memref<8x16xf32, #tpu.memory_space<vmem>>, vector<8x16xf32>,
    %c0_i32_9 = arith.constant 0 : i32
    %10 = arith.cmpi eq, %arg2, %c0_i32_9 : i32
    %11 = arith.extui %10 : i1 to i32
    %c0_i32_10 = arith.constant 0 : i32
    %12 = arith.cmpi ne, %11, %c0_i32_10 : i32
    scf.if %12 {
      %c0_11 = arith.constant 0 : index
      %c0_12 = arith.constant 0 : index
      %13 = vector.load %arg6[%c0_11, %c0_12] : memref<8x16xf32, #tpu.memory_space<vmem>>, vector<8x16xf32>
      %c0_13 = arith.constant 0 : index
      %c0_14 = arith.constant 0 : index
      %c0_15 = arith.constant 0 : index
      %c0_16 = arith.constant 0 : index
      %14 = vector.load %arg5[%c0_13, %c0_14, %c0_15, %c0_16] : memref<1x1x8x16xf32, #tpu.memory_space<vmem>>, vector<1x1x8x16xf32>
      %15 = vector.shape_cast %14 : vector<1x1x8x16xf32> to vector<8x16xf32>
      %16 = vector.shape_cast %13 : vector<8x16xf32> to vector<1x1x8x16xf32>
      tpu.vector_store %arg5[%c0_13, %c0_14, %c0_15, %c0_16], %16 {strides = array<i32>} : memref<1x1x8x16xf32, #tpu.memory_space<vmem>>, vector<1x1x8x16xf32>,
    } else {
    }
    return
  }
  func.func @transform_0(%arg0: i32, %arg1: i32, %arg2: i32) -> (i32, i32, i32) {
    %c1_i32 = arith.constant 1 : i32
    %0 = arith.muli %arg1, %c1_i32 : i32
    %1 = arith.addi %0, %arg2 : i32
    %c0_i32 = arith.constant 0 : i32
    %c0_i32_0 = arith.constant 0 : i32
    return %arg0, %c0_i32, %1 : i32, i32, i32
  }
  func.func @transform_1(%arg0: i32, %arg1: i32, %arg2: i32) -> (i32, i32) {
    %c1_i32 = arith.constant 1 : i32
    %0 = arith.muli %arg1, %c1_i32 : i32
    %1 = arith.addi %0, %arg2 : i32
    %c0_i32 = arith.constant 0 : i32
    %c0_i32_0 = arith.constant 0 : i32
    return %1, %c0_i32 : i32, i32
  }
  func.func @transform_2(%arg0: i32, %arg1: i32, %arg2: i32) -> (i32, i32, i32, i32) {
    %c0_i32 = arith.constant 0 : i32
    %c0_i32_0 = arith.constant 0 : i32
    %c0_i32_1 = arith.constant 0 : i32
    return %arg0, %arg1, %c0_i32, %c0_i32_0 : i32, i32, i32, i32
  }
}

</mosaic_0001>

<bundles_post_ra>
// kernel: tpu_custom_call.1
= control target key start
LH: loop header
LB: loop body
LE: loop exit
PB: predicated region body
PF: predicated region fallthrough
CT: control target
= control target key end

     0   :  { %7 = vsyncpa [#allocation4], 0  ;;  %s895_s0 = inlined_call_operand.vmem [shape: bf16[2,8,256], index: 0, kind: input, shape index: {}]   ;;  %s896_s1 = inlined_call_operand.vmem [shape: bf16[256,16], index: 1, kind: input, shape index: {}]   ;;  %s897_s2 = inlined_call_operand.hbm [shape: f32[2,1,8,16], index: 2, kind: output, shape index: {}]  }
   0x1   :  { %9 = vsyncpa [#allocation4 + $0x1], 0  ;;  %s747_s9 = smov 0   ;;  %s749_s10 = smov 0  }
   0x2   :  { %s751_s11 = smov 0   ;;  %s753_s12 = smov 0  }
   0x3   :  { %s755_s13 = smov 0   ;;  %s757_s14 = smov 0  }
   0x4 LB: > { %s501_s15 = sadd.s32 4294967295, %s729_s14   ;;  %s502_s16 = sadd.s32 4294967294, %s729_s14   ;;  %s729_s14 = sphi %s757_s14, %s15_s14   ;;  %s725_s13 = sphi %s755_s13, %s904_s13   ;;  %s721_s12 = sphi %s753_s12, %s903_s12   ;;  %s717_s11 = sphi %s751_s11, %s902_s11   ;;  %s713_s10 = sphi %s749_s10, %s901_s10   ;;  %s709_s9 = sphi %s747_s9, %s900_s9  }
   0x5   : > { %s34_s17 = sadd.s32 1, %s725_s13  ;;  %s101_s18 = sadd.s32 1, %s717_s11 }
   0x6   : > { %p36_p0 = scmp.ge.s32.totalorder %s34_s17, 2  ;;  %p111_p1 = scmp.ne.s32.totalorder %s717_s11, %s713_s10 }
   0x7   : > { %p112_p2 = scmp.eq.s32.totalorder %s501_s15, 1  ;;  %p117_p3 = scmp.ne.s32.totalorder %s713_s10, %s709_s9 }
   0x8   : > { %s906_s17 = smov (%p36_p0, %s34_s17), 0  ;;  %p118_p5 = scmp.eq.s32.totalorder %s502_s16, 1 }
   0x9   : > { %p787_p4 = por %p112_p2, %p111_p1  ;;  %s96_s20 = ssub.s32 %s725_s13, %s906_s17 }
   0xa   : > { %p506_p6 = scmp.ge.s32.totalorder %s729_s14, 1  ;;  %p99_p7 = scmp.eq.s32.totalorder %s96_s20, 0 }
   0xb   : > { %p794_p8 = por %p118_p5, %p117_p3  ;;  %p162_p9 = scmp.lt.s32.totalorder %s729_s14, 3 }
   0xc   : > { %s800_s22 = scalar_select %p99_p7, %s717_s11, %s101_s18  }
   0xd   : > { %p163_p10 = pnand %p506_p6, %p162_p9 }
   0xe   : > { %p197_p11 = scmp.lt.s32.totalorder (!%p163_p10), %s721_s12, 1  ;;  %s192_s24 = sand.u32 (!%p163_p10), 1, %s713_s10  }
   0xf   : > { %166 = sbr.rel (%p163_p10) target bundleno = 194 (0xc2), region = 28  ;;  %s507_s25 = sshll.u32 (!%p163_p10), %s192_s24, 3 }
  0x10   : > { %s194_s30 = scalar_lea.vmem (!%p163_p10), [#allocation3], %s507_s25  ;;  %s671_s15 = scalar_lea.hbm (!%p163_p10), %s897_s2, 16 }
  0x11   : > { %s406_s3 = sshll.u32 (!%p163_p10), %s194_s30, 4  ;;  %s407_s3 = int_to_ptr.vmem [resolvable:$true] %s406_s3 }
  0x14   : > { %v586_v0 = vld [vmem:[%s896_s1 + $0x38] sm:$0xff]  ;;  %v585_v2 = vld [vmem:[%s896_s1 + $0x30] sm:$0xff]  ;;  %v584_v4 = vld [vmem:[%s896_s1 + $0x28] sm:$0xff]  ;;  %s198_s18 = scalar_select %p197_p11, %s721_s12, 1  ;;  %vm219_vm0 = vcmask 130048   ;;  %v731_v21 = vmov 0.0  }
  0x15   : > { %v594_v1 = vld [vmem:[%s896_s1 + $0x78] sm:$0xff]  ;;  %358 = vmatpush.bf16.msra.mxu0 %v586_v0  ;;  %v593_v3 = vld [vmem:[%s896_s1 + $0x70] sm:$0xff]  ;;  %v592_v5 = vld [vmem:[%s896_s1 + $0x68] sm:$0xff]  ;;  %220 = vst.msk [vmem:[#allocation2] sm:$0xff] %vm219_vm0, %v731_v21 }
  0x16   : > { %371 = vmatpush.bf16.msra.mxu1 %v594_v1  ;;  %v583_v6 = vld [vmem:[%s896_s1 + $0x20] sm:$0xff]  ;;  %v582_v8 = vld [vmem:[%s896_s1 + $0x18] sm:$0xff]  ;;  %s578_s26 = sshll.u32 %s198_s18, 3  ;;  %v581_v10 = vld [vmem:[%s896_s1 + $0x10] sm:$0xff] }
  0x17   : > { %v591_v7 = vld [vmem:[%s896_s1 + $0x60] sm:$0xff]  ;;  %v590_v9 = vld [vmem:[%s896_s1 + $0x58] sm:$0xff]  ;;  %v589_v11 = vld [vmem:[%s896_s1 + $0x50] sm:$0xff]  ;;  %s204_s5 = scalar_lea.vmem %s895_s0, %s578_s26  ;;  %s575_s26 = sshll.u32 %s721_s12, 3 }
  0x18   : > { %v580_v12 = vld [vmem:[%s896_s1 + $0x8] sm:$0xff]  ;;  %v222_v14 = vld [vmem:[%s204_s5] sm:$0xff]  ;;  %s404_s29 = scalar_lea.hbm %s897_s2, %s575_s26  ;;  %s393_s5 = scalar_lea.sflag [#allocation4], %s192_s24 }
  0x19   : > { %359 = vmatpush.bf16.msra.mxu0 %v585_v2  ;;  %v588_v13 = vld [vmem:[%s896_s1 + $0x48] sm:$0xff]  ;;  %v256_v15 = vunpack.c.l.b16 %v222_v14  ;;  %v257_v16 = vunpack.c.h.b16 %v222_v14  ;;  %v579_v17 = vld [vmem:[%s896_s1] sm:$0xff]  ;;  %s408_s4 = sshll.u32 %s404_s29, 4  ;;  %s409_s4 = int_to_ptr.hbm [resolvable:$true] %s408_s4 }
  0x1a   : > { %372 = vmatpush.bf16.msra.mxu1 %v593_v3  ;;  %v587_v18 = vld [vmem:[%s896_s1 + $0x40] sm:$0xff]  ;;  %s665_s12 = sshra.s32 %s409_s4, 4  ;;  %s666_s12 = int_to_ptr.hbm [resolvable:$true] %s665_s12 }
  0x1b   : > { %v258_v19 = vpack.c.b16 %v256_v15, %v256_v15  ;;  %v259_v20 = vpack.c.b16 %v257_v16, %v257_v16  ;;  %s667_s6 = scalar_lea.hbm %s666_s12, 8  ;;  %p672_p1 = scmp.lt.s32.totalorder %s666_s12, %s897_s2 }
  0x1c   : > { %v221_v23 = vld [vmem:[#allocation2] sm:$0xff]  ;;  %p668_p12 = scmp.ne.s32.totalorder %s666_s12, %s667_s6  ;;  %p673_p2 = scmp.lt.s32.totalorder %s671_s15, %s667_s6 }
  0x1d   : > { %360 = vmatpush.bf16.msra.mxu0 %v584_v4 }
  0x1e   : > { %373 = vmatpush.bf16.msra.mxu1 %v592_v5  ;;  %p669_p13 = pnand %p668_p12, %p787_p4  ;;  %p674_p3 = por %p673_p2, %p672_p1 }
  0x20   : > { %p670_p0 = pneg %p669_p13 }
  0x21   : > { %361 = vmatpush.bf16.msra.mxu0 %v583_v6 }
  0x22   : > { %374 = vmatpush.bf16.msra.mxu1 %v591_v7  ;;  %p675_p5 = pnand %p674_p3, %p670_p0 }
  0x25   : > { %362 = vmatpush.bf16.msra.mxu0 %v582_v8 }
  0x26   : > { %375 = vmatpush.bf16.msra.mxu1 %v590_v9 }
  0x29   : > { %363 = vmatpush.bf16.msra.mxu0 %v581_v10 }
  0x2a   : > { %376 = vmatpush.bf16.msra.mxu1 %v589_v11 }
  0x2d   : > { %364 = vmatpush.bf16.msra.mxu0 %v580_v12 }
  0x2e   : > { %377 = vmatpush.bf16.msra.mxu1 %v588_v13 }
  0x31   : > { %365 = vmatpush.bf16.msra.mxu0 %v579_v17 }
  0x32   : > { %378 = vmatpush.bf16.msra.mxu1 %v587_v18 }
  0x34   : > { %366 = vmatmul.bf16.vlgmr.msra.gmra.mxu0 %v258_v19 }
  0x35   : > { %379 = vmatmul.bf16.vlgmr.msra.gmra.mxu1 %v259_v20 }
  0xb1   : > { %v367_v22 = vpop.f32.mrf.mxu0 }
  0xb2   : > { %v380_v24 = vpop.f32.mrf.mxu1 }
  0xb3   : > { %v381_v25 = vadd.f32 %v380_v24, %v367_v22 }
  0xb5   : > { %v384_v26 = vadd.f32 %v381_v25, %v221_v23 }
  0xb7   : > { %386 = vst.msk [vmem:[#allocation2] sm:$0xff] %vm219_vm0, %v384_v26 }
  0xb9   : > { %v369_v27 = vpop.f32.mrf.mxu0 }
  0xba   : > { %v382_v28 = vpop.f32.mrf.mxu1 }
  0xbe   : > { %v390_v29 = vld [vmem:[#allocation2] sm:$0xff] }
  0xbf   : > { %391 = vst.msk [vmem:[%s194_s30] sm:$0xff] %vm219_vm0, %v390_v29 }
  0xc0   : > { %678 = shalt.err (!%p675_p5)
}
  0xc1   : > { %595 = dma.vmem_to_hbm [thread:$0]  (%p787_p4), %s407_s3, 128, %s409_s4, %s393_s5  }
  0xc2 PF: > { %p601_p6 = scmp.ge.s32.totalorder %s729_s14, 2  ;;  %s420_s20 = sand.u32 1, %s709_s9  }
  0xc3   : > { %s421_s23 = scalar_lea.sflag [#allocation4], %s420_s20 }
  0xc4   : > { %p598_p7 = pnand %p601_p6, %p794_p8 }
  0xc6   : > { %p599_p9 = pneg %p598_p7 }
  0xc8   : > { %704 = dma.done.wait (%p599_p9), %s421_s23, 128  }
  0xc9   : > { %706 = vsyncadd (%p599_p9), %s421_s23, 4294967168  ;;  %s15_s14 = sadd.s32 1, %s729_s14   ;;  %s900_s9 = smov %s713_s10 }
  0xca   : > { %p12_p10 = scmp.ge.s32.totalorder %s15_s14, 4   ;;  %s901_s10 = smov %s717_s11 }
  0xcb   : > { %s902_s11 = smov %s800_s22  ;;  %s903_s12 = smov %s725_s13 }
  0xcc   : > { %s904_s13 = smov %s906_s17  ;;  %14 = sbr.rel (!%p12_p10) target bundleno = 4 (0x4), region = 74 }
  0xd1   :  { %427 = vsyncpa [#allocation4], 1 }
  0xd2   :  { %429 = vsyncpa [#allocation4 + $0x1], 1 }

</bundles_post_ra>
